<compile_context>
chip_gen: v5e
topology: v5e:2x2
jax: 0.10.0
libtpu: 0.0.40
codegen_flags: <defaults>
</compile_context>

<pallas_src>
from typing import Optional

import jax
import jax.numpy as jnp
from jax.experimental import pallas as pl
from jax.experimental.pallas import tpu as pltpu


def _round_up(x: int, m: int) -> int:
    return ((x + m - 1) // m) * m


def _pick_tile_n(N: int, H: int, num_parts: int, itemsize: int,
                 vmem_budget_bytes: int = 8 * 1024 * 1024) -> int:
    """Largest row-tile (multiple of 8, <= 2048) whose double-buffered
    activation traffic fits the VMEM budget."""
    per_row = (num_parts + 1) * 2 * H * itemsize          # inputs + output, 2 bufs
    t = vmem_budget_bytes // max(per_row, 1)
    t = min(t, 2048, _round_up(N, 8))
    t = max(8, (t // 8) * 8)
    return t


def _make_update_kernel(num_parts: int, num_hidden: int):
    """Build kernel: out = silu(sum_k part_k @ W1[k*H:(k+1)*H] + b1) @ W2 + b2."""
    H = num_hidden

    def kernel(*refs):
        part_refs = refs[:num_parts]
        w1_ref, b1_ref, w2_ref, b2_ref, o_ref = refs[num_parts:]

        # --- first linear: fused "concat" via split-W1 accumulation (f32 acc) ---
        h = jnp.dot(part_refs[0][...], w1_ref[0:H, :],
                    preferred_element_type=jnp.float32)
        for k in range(1, num_parts):
            h = h + jnp.dot(part_refs[k][...], w1_ref[k * H:(k + 1) * H, :],
                            preferred_element_type=jnp.float32)
        h = h + b1_ref[...]                 # bias kept in f32

        # --- SiLU in f32 on the accumulator (EUP sigmoid, VPU mul) ---
        h = h * jax.nn.sigmoid(h)

        # --- second linear (cast activations to weight dtype for the MXU) ---
        out = jnp.dot(h.astype(w2_ref.dtype), w2_ref[...],
                      preferred_element_type=jnp.float32) + b2_ref[...]
        o_ref[...] = out.astype(o_ref.dtype)

    return kernel


def update_layer_forward(x, bound_mes, upadj_mes, params, *,
                         tile_n: Optional[int] = None,
                         use_pallas: Optional[bool] = None):
    """JAX/Pallas equivalent of UpdateLayer.forward.

    x:          [N, H]
    bound_mes:  [N, H] or None
    upadj_mes:  [N, H] or None
    params: dict with 'w1' [(num_mes+1)*H, H], 'b1' [H], 'w2' [H, H], 'b2' [H]
    """
    parts = [x]
    if bound_mes is not None:
        parts.append(bound_mes)
    if upadj_mes is not None:
        parts.append(upadj_mes)
    num_parts = len(parts)

    N = x.shape[0]
    H = params["w2"].shape[0]
    F = num_parts * H
    assert params["w1"].shape == (F, H), (params["w1"].shape, (F, H))

    compute_dtype = x.dtype
    w1 = params["w1"].astype(compute_dtype)
    w2 = params["w2"].astype(compute_dtype)
    b1 = params["b1"].reshape(1, H).astype(jnp.float32)   # biases stay f32
    b2 = params["b2"].reshape(1, H).astype(jnp.float32)
    parts = [p.astype(compute_dtype) for p in parts]

    if use_pallas is None:
        # Per-pallas_call overhead dominates for tiny inputs; let XLA fuse those.
        use_pallas = N >= 512

    if not use_pallas:
        h = jnp.zeros((N, H), jnp.float32) + b1
        for k, p in enumerate(parts):
            h = h + jnp.dot(p, w1[k * H:(k + 1) * H],
                            preferred_element_type=jnp.float32)
        h = h * jax.nn.sigmoid(h)
        out = jnp.dot(h.astype(compute_dtype), w2,
                      preferred_element_type=jnp.float32) + b2
        return out.astype(compute_dtype)

    itemsize = jnp.dtype(compute_dtype).itemsize
    if tile_n is None:
        tile_n = _pick_tile_n(N, H, num_parts, itemsize)
    else:
        tile_n = max(8, min(_round_up(tile_n, 8), _round_up(N, 8)))
    grid = (pl.cdiv(N, tile_n),)

    part_specs = [pl.BlockSpec((tile_n, H), lambda i: (i, 0))
                  for _ in range(num_parts)]
    weight_specs = [
        pl.BlockSpec((F, H), lambda i: (0, 0)),   # W1: VMEM-resident across grid
        pl.BlockSpec((1, H), lambda i: (0, 0)),   # b1
        pl.BlockSpec((H, H), lambda i: (0, 0)),   # W2
        pl.BlockSpec((1, H), lambda i: (0, 0)),   # b2
    ]

    cost = pl.CostEstimate(
        flops=2 * N * (F * H + H * H),
        transcendentals=N * H,                                    # sigmoid
        bytes_accessed=(N * F + 2 * N * H) * itemsize
        + (F * H + H * H) * itemsize + 2 * H * 4,
    )

    out = pl.pallas_call(
        _make_update_kernel(num_parts, H),
        out_shape=jax.ShapeDtypeStruct((N, H), compute_dtype),
        grid=grid,
        in_specs=part_specs + weight_specs,
        out_specs=pl.BlockSpec((tile_n, H), lambda i: (i, 0)),
        compiler_params=pltpu.CompilerParams(
            dimension_semantics=("parallel",),   # shards row-tiles across TCs (v7x)
        ),
        cost_estimate=cost,
    )(*parts, w1, b1, w2, b2)
    return out


def init_update_layer_params(key, num_hidden, num_mes):
    """Deterministic init matching nn.Linear shapes (weights kept as [in, out])."""
    in1 = (num_mes + 1) * num_hidden
    k1, k2, k3, k4 = jax.random.split(key, 4)
    lim1 = 1.0 / jnp.sqrt(in1)
    lim2 = 1.0 / jnp.sqrt(num_hidden)
    return {
        "w1": jax.random.uniform(k1, (in1, num_hidden), jnp.float32, -lim1, lim1),
        "b1": jax.random.uniform(k2, (num_hidden,), jnp.float32, -lim1, lim1),
        "w2": jax.random.uniform(k3, (num_hidden, num_hidden), jnp.float32, -lim2, lim2),
        "b2": jax.random.uniform(k4, (num_hidden,), jnp.float32, -lim2, lim2),
    }


def _reference_forward(x, bound_mes, upadj_mes, params):
    parts = [x]
    if bound_mes is not None:
        parts.append(bound_mes)
    if upadj_mes is not None:
        parts.append(upadj_mes)
    state = jnp.concatenate(parts, axis=1)
    h = state @ params["w1"] + params["b1"]
    h = h * jax.nn.sigmoid(h)
    return h @ params["w2"] + params["b2"]


if __name__ == "__main__":
    num_hidden = 32
    num_mes = 2          # both bound_mes and upadj_mes present -> (num_mes+1)*H input

    key = jax.random.PRNGKey(0)
    kp, kx, kb, ku = jax.random.split(key, 4)
    params = init_update_layer_params(kp, num_hidden, num_mes)

    # --- Case 1: small N, forced through the Pallas kernel (single 8-row tile) ---
    N_small = 8
    x = jax.random.normal(kx, (N_small, num_hidden), jnp.float32)
    bound_mes = jax.random.normal(kb, (N_small, num_hidden), jnp.float32)
    upadj_mes = jax.random.normal(ku, (N_small, num_hidden), jnp.float32)

    out_small = jax.block_until_ready(
        update_layer_forward(x, bound_mes, upadj_mes, params, use_pallas=True))
    ref_small = _reference_forward(x, bound_mes, upadj_mes, params)
    assert out_small.shape == (N_small, num_hidden)
    assert jnp.allclose(out_small, ref_small, atol=1e-5, rtol=1e-5)

    # --- Case 2: larger, ragged N -> multi-step grid with a partial last tile ---
    N_big = 600
    kx2, kb2, ku2 = jax.random.split(jax.random.PRNGKey(1), 3)
    x2 = jax.random.normal(kx2, (N_big, num_hidden), jnp.float32)
    bm2 = jax.random.normal(kb2, (N_big, num_hidden), jnp.float32)
    um2 = jax.random.normal(ku2, (N_big, num_hidden), jnp.float32)

    out_big = jax.block_until_ready(
        update_layer_forward(x2, bm2, um2, params, tile_n=256))  # grid = 3 tiles
    ref_big = _reference_forward(x2, bm2, um2, params)
    assert out_big.shape == (N_big, num_hidden)
    assert jnp.allclose(out_big, ref_big, atol=1e-5, rtol=1e-5)

    # --- Case 2b: auto tile sizing on the same ragged input (single big tile) ---
    out_auto = jax.block_until_ready(
        update_layer_forward(x2, bm2, um2, params, use_pallas=True))
    assert jnp.allclose(out_auto, ref_big, atol=1e-5, rtol=1e-5)

    # --- Case 3: single message (bound_mes only) exercises variable-arity fusion ---
    params1 = init_update_layer_params(jax.random.PRNGKey(2), num_hidden, 1)
    out_one = jax.block_until_ready(
        update_layer_forward(x, bound_mes, None, params1, use_pallas=True))
    ref_one = _reference_forward(x, bound_mes, None, params1)
    assert jnp.allclose(out_one, ref_one, atol=1e-5, rtol=1e-5)

    print("KERNEL_OK")
</pallas_src>

<mosaic_0001>
module attributes {stable_mosaic.version = 11 : i64} {
  func.func @kernel(%arg0: i32, %arg1: memref<8x32xf32, #tpu.memory_space<vmem>>, %arg2: memref<8x32xf32, #tpu.memory_space<vmem>>, %arg3: memref<8x32xf32, #tpu.memory_space<vmem>>, %arg4: memref<96x32xf32, #tpu.memory_space<vmem>>, %arg5: memref<1x32xf32, #tpu.memory_space<vmem>>, %arg6: memref<32x32xf32, #tpu.memory_space<vmem>>, %arg7: memref<1x32xf32, #tpu.memory_space<vmem>>, %arg8: memref<8x32xf32, #tpu.memory_space<vmem>>) attributes {dimension_semantics = [#tpu.dimension_semantics<parallel>], iteration_bounds = array<i64: 1>, scalar_prefetch = 0 : i64, scratch_operands = 0 : i64, tpu.core_type = #tpu.core_type<tc>, window_params = [{transform_indices = @transform_0, window_bounds = array<i64: 8, 32>}, {transform_indices = @transform_1, window_bounds = array<i64: 8, 32>}, {transform_indices = @transform_2, window_bounds = array<i64: 8, 32>}, {pipeline_mode = #tpu.pipeline_mode<synchronous>, transform_indices = @transform_3, window_bounds = array<i64: 96, 32>}, {pipeline_mode = #tpu.pipeline_mode<synchronous>, transform_indices = @transform_4, window_bounds = array<i64: 1, 32>}, {pipeline_mode = #tpu.pipeline_mode<synchronous>, transform_indices = @transform_5, window_bounds = array<i64: 32, 32>}, {pipeline_mode = #tpu.pipeline_mode<synchronous>, transform_indices = @transform_6, window_bounds = array<i64: 1, 32>}, {transform_indices = @transform_7, window_bounds = array<i64: 8, 32>}]} {
    %c0 = arith.constant 0 : index
    %c0_0 = arith.constant 0 : index
    %0 = vector.load %arg1[%c0, %c0_0] : memref<8x32xf32, #tpu.memory_space<vmem>>, vector<8x32xf32>
    %c0_1 = arith.constant 0 : index
    %c0_2 = arith.constant 0 : index
    %1 = vector.load %arg4[%c0_1, %c0_2] : memref<96x32xf32, #tpu.memory_space<vmem>>, vector<32x32xf32>
    %cst = arith.constant dense<0.000000e+00> : vector<8x32xf32>
    %2 = tpu.matmul %0, %1, %cst {dimension_numbers = #tpu.dot_dimension_numbers<[1], [0], [0], [1], [0, 0, 1, 1], [], []>} : vector<8x32xf32>, vector<32x32xf32>, vector<8x32xf32> -> vector<8x32xf32>
    %c0_3 = arith.constant 0 : index
    %c0_4 = arith.constant 0 : index
    %3 = vector.load %arg2[%c0_3, %c0_4] : memref<8x32xf32, #tpu.memory_space<vmem>>, vector<8x32xf32>
    %c32 = arith.constant 32 : index
    %c0_5 = arith.constant 0 : index
    %4 = vector.load %arg4[%c32, %c0_5] : memref<96x32xf32, #tpu.memory_space<vmem>>, vector<32x32xf32>
    %cst_6 = arith.constant dense<0.000000e+00> : vector<8x32xf32>
    %5 = tpu.matmul %3, %4, %cst_6 {dimension_numbers = #tpu.dot_dimension_numbers<[1], [0], [0], [1], [0, 0, 1, 1], [], []>} : vector<8x32xf32>, vector<32x32xf32>, vector<8x32xf32> -> vector<8x32xf32>
    %6 = arith.addf %2, %5 : vector<8x32xf32>
    %c0_7 = arith.constant 0 : index
    %c0_8 = arith.constant 0 : index
    %7 = vector.load %arg3[%c0_7, %c0_8] : memref<8x32xf32, #tpu.memory_space<vmem>>, vector<8x32xf32>
    %c64 = arith.constant 64 : index
    %c0_9 = arith.constant 0 : index
    %8 = vector.load %arg4[%c64, %c0_9] : memref<96x32xf32, #tpu.memory_space<vmem>>, vector<32x32xf32>
    %cst_10 = arith.constant dense<0.000000e+00> : vector<8x32xf32>
    %9 = tpu.matmul %7, %8, %cst_10 {dimension_numbers = #tpu.dot_dimension_numbers<[1], [0], [0], [1], [0, 0, 1, 1], [], []>} : vector<8x32xf32>, vector<32x32xf32>, vector<8x32xf32> -> vector<8x32xf32>
    %10 = arith.addf %6, %9 : vector<8x32xf32>
    %c0_11 = arith.constant 0 : index
    %c0_12 = arith.constant 0 : index
    %11 = vector.load %arg5[%c0_11, %c0_12] : memref<1x32xf32, #tpu.memory_space<vmem>>, vector<1x32xf32>
    %12 = vector.broadcast %11 : vector<1x32xf32> to vector<8x32xf32>
    %13 = arith.addf %10, %12 : vector<8x32xf32>
    %14 = arith.negf %13 : vector<8x32xf32>
    %15 = math.exp %14 : vector<8x32xf32>
    %cst_13 = arith.constant 1.000000e+00 : f32
    %16 = vector.broadcast %cst_13 : f32 to vector<8x32xf32>
    %17 = arith.addf %16, %15 : vector<8x32xf32>
    %18 = arith.divf %16, %17 : vector<8x32xf32>
    %19 = arith.mulf %13, %18 : vector<8x32xf32>
    %c0_14 = arith.constant 0 : index
    %c0_15 = arith.constant 0 : index
    %20 = vector.load %arg6[%c0_14, %c0_15] : memref<32x32xf32, #tpu.memory_space<vmem>>, vector<32x32xf32>
    %cst_16 = arith.constant dense<0.000000e+00> : vector<8x32xf32>
    %21 = tpu.matmul %19, %20, %cst_16 {dimension_numbers = #tpu.dot_dimension_numbers<[1], [0], [0], [1], [0, 0, 1, 1], [], []>} : vector<8x32xf32>, vector<32x32xf32>, vector<8x32xf32> -> vector<8x32xf32>
    %c0_17 = arith.constant 0 : index
    %c0_18 = arith.constant 0 : index
    %22 = vector.load %arg7[%c0_17, %c0_18] : memref<1x32xf32, #tpu.memory_space<vmem>>, vector<1x32xf32>
    %23 = vector.broadcast %22 : vector<1x32xf32> to vector<8x32xf32>
    %24 = arith.addf %21, %23 : vector<8x32xf32>
    %c0_19 = arith.constant 0 : index
    %c0_20 = arith.constant 0 : index
    %25 = vector.load %arg8[%c0_19, %c0_20] : memref<8x32xf32, #tpu.memory_space<vmem>>, vector<8x32xf32>
    tpu.vector_store %arg8[%c0_19, %c0_20], %24 {strides = array<i32>} : memref<8x32xf32, #tpu.memory_space<vmem>>, vector<8x32xf32>,
    return
  }
  func.func @transform_0(%arg0: i32) -> (i32, i32) {
    %c0_i32 = arith.constant 0 : i32
    %c0_i32_0 = arith.constant 0 : i32
    return %arg0, %c0_i32 : i32, i32
  }
  func.func @transform_1(%arg0: i32) -> (i32, i32) {
    %c0_i32 = arith.constant 0 : i32
    %c0_i32_0 = arith.constant 0 : i32
    return %arg0, %c0_i32 : i32, i32
  }
  func.func @transform_2(%arg0: i32) -> (i32, i32) {
    %c0_i32 = arith.constant 0 : i32
    %c0_i32_0 = arith.constant 0 : i32
    return %arg0, %c0_i32 : i32, i32
  }
  func.func @transform_3(%arg0: i32) -> (i32, i32) {
    %c0_i32 = arith.constant 0 : i32
    %c0_i32_0 = arith.constant 0 : i32
    %c0_i32_1 = arith.constant 0 : i32
    return %c0_i32, %c0_i32_0 : i32, i32
  }
  func.func @transform_4(%arg0: i32) -> (i32, i32) {
    %c0_i32 = arith.constant 0 : i32
    %c0_i32_0 = arith.constant 0 : i32
    %c0_i32_1 = arith.constant 0 : i32
    return %c0_i32, %c0_i32_0 : i32, i32
  }
  func.func @transform_5(%arg0: i32) -> (i32, i32) {
    %c0_i32 = arith.constant 0 : i32
    %c0_i32_0 = arith.constant 0 : i32
    %c0_i32_1 = arith.constant 0 : i32
    return %c0_i32, %c0_i32_0 : i32, i32
  }
  func.func @transform_6(%arg0: i32) -> (i32, i32) {
    %c0_i32 = arith.constant 0 : i32
    %c0_i32_0 = arith.constant 0 : i32
    %c0_i32_1 = arith.constant 0 : i32
    return %c0_i32, %c0_i32_0 : i32, i32
  }
  func.func @transform_7(%arg0: i32) -> (i32, i32) {
    %c0_i32 = arith.constant 0 : i32
    %c0_i32_0 = arith.constant 0 : i32
    return %arg0, %c0_i32 : i32, i32
  }
}

</mosaic_0001>

<bundles_post_ra>
// kernel: tpu_custom_call.1
= control target key start
LH: loop header
LB: loop body
LE: loop exit
PB: predicated region body
PF: predicated region fallthrough
CT: control target
= control target key end

     0   :  { %vm37_vm0 = vcmask 261120   ;;  %s336_s0 = inlined_call_operand.vmem [shape: f32[8,32], index: 0, kind: input, shape index: {}]   ;;  %s337_s1 = inlined_call_operand.vmem [shape: f32[8,32], index: 1, kind: input, shape index: {}]   ;;  %s338_s2 = inlined_call_operand.vmem [shape: f32[8,32], index: 2, kind: input, shape index: {}]   ;;  %s339_s3 = inlined_call_operand.vmem [shape: f32[96,32], index: 3, kind: input, shape index: {}]   ;;  %s340_s4 = inlined_call_operand.vmem [shape: f32[1,32], index: 4, kind: input, shape index: {}]   ;;  %s341_s5 = inlined_call_operand.vmem [shape: f32[32,32], index: 5, kind: input, shape index: {}]   ;;  %s342_s6 = inlined_call_operand.vmem [shape: f32[1,32], index: 6, kind: input, shape index: {}]   ;;  %s343_s7 = inlined_call_operand.hbm [shape: f32[8,32], index: 7, kind: output, shape index: {}]  }
   0x1   :  { %v88_v0 = vld [vmem:[%s339_s3 + $0x58] sm:$0xff]  ;;  %v87_v1 = vld [vmem:[%s339_s3 + $0x50] sm:$0xff]  ;;  %v86_v5 = vld [vmem:[%s339_s3 + $0x48] sm:$0xff] }
   0x2   :  { %v36_v2 = vld [vmem:[%s339_s3 + $0x38] sm:$0xff]  ;;  %104 = vmatpush.msra.mxu2 %v88_v0  ;;  %v35_v4 = vld [vmem:[%s339_s3 + $0x30] sm:$0xff]  ;;  %v85_v7 = vld [vmem:[%s339_s3 + $0x40] sm:$0xff] }
   0x3   :  { %53 = vmatpush.msra.mxu0 %v36_v2  ;;  %v31_v3 = vld [vmem:[%s339_s3 + $0x18] sm:$0xff]  ;;  %v30_v6 = vld [vmem:[%s339_s3 + $0x10] sm:$0xff]  ;;  %v34_v8 = vld [vmem:[%s339_s3 + $0x28] sm:$0xff] }
   0x4   :  { %76 = vmatpush.msra.mxu1 %v31_v3  ;;  %105 = vmatpush.msra.mxu2 %v87_v1  ;;  %v29_v9 = vld [vmem:[%s339_s3 + $0x8] sm:$0xff]  ;;  %v84_v10 = vld [vmem:[%s338_s2] sm:$0xff] }
   0x5   :  { %54 = vmatpush.msra.mxu0 %v35_v4  ;;  %v33_v11 = vld [vmem:[%s339_s3 + $0x20] sm:$0xff] }
   0x6   :  { %77 = vmatpush.msra.mxu1 %v30_v6  ;;  %v28_v12 = vld [vmem:[%s339_s3] sm:$0xff]  ;;  %106 = vmatpush.msra.mxu2 %v86_v5 }
   0x7   :  { %55 = vmatpush.msra.mxu0 %v34_v8 }
   0x8   :  { %12 = vsyncpa [#allocation3], 0  ;;  %78 = vmatpush.msra.mxu1 %v29_v9  ;;  %v32_v13 = vld [vmem:[%s337_s1] sm:$0xff]  ;;  %107 = vmatpush.msra.mxu2 %v85_v7  ;;  %v141_v15 = vld [vmem:[%s341_s5 + $0x18] sm:$0xff]  ;;  %s224_s14 = smov [#allocation2]   ;;  %s177_s18 = sshll.u32 %s343_s7, 4  ;;  %s178_s18 = int_to_ptr.hbm [resolvable:$true] %s177_s18 }
   0x9   :  { %v27_v14 = vld [vmem:[%s336_s0] sm:$0xff]  ;;  %56 = vmatpush.msra.mxu0 %v33_v11  ;;  %188 = vmatmul.msk.f32.vlgmr.msra.gmra.mxu2 %vm37_vm0, %v84_v10  ;;  %v140_v16 = vld [vmem:[%s341_s5 + $0x10] sm:$0xff]  ;;  %v139_v17 = vld [vmem:[%s341_s5 + $0x8] sm:$0xff]  ;;  %s175_s15 = sshll.u32 %s224_s14, 4  ;;  %s176_s15 = int_to_ptr.vmem [resolvable:$true] %s175_s15 }
   0xa   :  { %79 = vmatpush.msra.mxu1 %v28_v12  ;;  %186 = vmatmul.msk.f32.vlgmr.msra.gmra.mxu0 %vm37_vm0, %v32_v13  ;;  %v138_v18 = vld [vmem:[%s341_s5] sm:$0xff] }
   0xb   :  { %187 = vmatmul.msk.f32.vlgmr.msra.gmra.mxu1 %vm37_vm0, %v27_v14  ;;  %161 = vmatpush.msra.mxu3 %v141_v15  ;;  %v192_v22 = vld [vmem:[%s340_s4] ss:$0 sm:$0xff] }
   0xc   :  { %v193_v40 = vld [vmem:[%s342_s6] ss:$0 sm:$0xff] }
   0xd   :  { %162 = vmatpush.msra.mxu3 %v140_v16 }
   0xf   :  { %163 = vmatpush.msra.mxu3 %v139_v17 }
  0x11   :  { %164 = vmatpush.msra.mxu3 %v138_v18 }
  0x87   :  { %v58_v19 = vpop.f32.mrf.mxu0 }
  0x88   :  { %v81_v20 = vpop.f32.mrf.mxu1 }
  0x89   :  { %v82_v21 = vadd.f32 %v81_v20, %v58_v19 }
  0x8c   :  { %v109_v23 = vpop.f32.mrf.mxu2 }
  0x8d   :  { %v112_v24 = vadd.f32 %v109_v23, %v82_v21 }
  0x8f   :  { %v117_v25 = vadd.f32 %v192_v22, %v112_v24 }
  0x91   :  { %v189_v26 = vmul.f32 -1.442695, %v117_v25 }
  0x93   :  { %194 = vpow2.f32 %v189_v26 }
  0x99   :  { %v195_v27 = vpop.eup %194 }
  0x9a   :  { %v121_v28 = vadd.f32 1.0, %v195_v27 }
  0x9c   :  { %196 = vrcp.f32 %v121_v28  ;;  %v133_v32 = vand.u32 2147483648, %v121_v28  ;;  %v131_v34 = vand.u32 2147483647, %v121_v28  ;;  %vm127_vm2 = vweird.f32 %v121_v28 }
  0x9e   :  { %v134_v36 = vor.u32 1.1754944e-38, %v133_v32  ;;  %vm132_vm4 = vcmp.eq.f32.partialorder %v131_v34, 8.507059e+37 }
  0xa2   :  { %v197_v29 = vpop.eup %196 }
  0xa3   :  { %v123_v30 = vmul.f32 %v197_v29, %v121_v28  ;;  %vm128_vm1 = vweird.f32 %v197_v29 }
  0xa4   :  { %vm129_vm3 = vmor %vm127_vm2, %vm128_vm1 }
  0xa5   :  { %v124_v31 = vsub.f32 1.0, %v123_v30 }
  0xa7   :  { %v125_v33 = vmul.f32 %v197_v29, %v124_v31 }
  0xa9   :  { %v126_v35 = vadd.f32 %v197_v29, %v125_v33 }
  0xab   :  { %v130_v37 = vsel %vm129_vm3, %v197_v29, %v126_v35 }
  0xac   :  { %v135_v38 = vsel %vm132_vm4, %v134_v36, %v130_v37 }
  0xad   :  { %v137_v39 = vmul.f32 %v135_v38, %v117_v25 }
  0xaf   :  { %190 = vmatmul.msk.f32.vlgmr.msra.gmra.mxu3 %vm37_vm0, %v137_v39 }
 0x132   :  { %v166_v41 = vpop.f32.mrf.mxu3 }
 0x133   :  { %v167_v42 = vadd.f32 %v193_v40, %v166_v41 }
 0x135   :  { %169 = vst.msk [vmem:[#allocation2] sm:$0xff] %vm37_vm0, %v167_v42 }
 0x136   :  { %180 = dma.vmem_to_hbm [thread:$0]  %s176_s15, 128, %s178_s18, [#allocation3]  }
 0x137   :  { %222 = dma.done.wait [#allocation3], 128  }
 0x138   :  { %223 = vsyncadd [#allocation3], 4294967168 }
 0x139   :  { %185 = vsyncpa [#allocation3], 1 }

</bundles_post_ra>
